<compile_context>
chip_gen: v7x
topology: tpu7x:2x2x1
jax: 0.10.0
libtpu: 0.0.40
codegen_flags: <defaults>
</compile_context>

<pallas_src>
import jax
import jax.numpy as jnp
from jax.experimental import pallas as pl
from jax.experimental.pallas import tpu as pltpu

PAD_OUT = 8  # padded output width (true output width is 2); full-dim block => legal


def _cdiv(a, b):
    return -(-a // b)


def _round_up(a, b):
    return b * _cdiv(a, b)


def dqn_kernel(x_ref, w1_ref, b1_ref, w2_ref, b2_ref, w3_ref, b3_ref, o_ref):
    # In-kernel bf16 cast of the f32 x tile (tiny VPU work, avoids an HBM pass).
    x = x_ref[...].astype(jnp.bfloat16)
    # fc1: bf16 MXU, f32 accumulate, f32 bias add, ReLU at bf16 density.
    h1 = jnp.dot(x, w1_ref[...], preferred_element_type=jnp.float32)
    h1 = jnp.maximum((h1 + b1_ref[...]).astype(jnp.bfloat16), 0)
    # fc2
    h2 = jnp.dot(h1, w2_ref[...], preferred_element_type=jnp.float32)
    h2 = jnp.maximum((h2 + b2_ref[...]).astype(jnp.bfloat16), 0)
    # out (no activation), 8-wide padded f32 store.
    o = jnp.dot(h2, w3_ref[...], preferred_element_type=jnp.float32)
    o_ref[...] = o + b3_ref[...]


def _pick_tile(B, tb_max):
    """Balanced batch tile: multiple of 16, even step count when >1, minimal padding."""
    tb_max = max(16, _round_up(int(tb_max), 16))
    nsteps = _cdiv(B, tb_max)
    if nsteps > 1 and nsteps % 2:
        nsteps += 1                      # even steps -> both v7x TensorCores busy
    tb = max(16, _round_up(_cdiv(B, nsteps), 16))
    return tb


def dqn_forward(x, params, *, tb_max=2048):
    """x: [B, 5] float32 -> [B, 2] float32."""
    w1, b1, w2, b2, w3, b3 = params
    B, F = x.shape
    H1 = w1.shape[1]
    H2 = w2.shape[1]
    NOUT = w3.shape[1]

    tb = _pick_tile(B, tb_max)
    B_pad = tb * _cdiv(B, tb)

    # Pad batch with zero rows (sliced off at the end); x stays f32.
    x_p = x if B_pad == B else jnp.zeros((B_pad, F), x.dtype).at[:B].set(x)

    # bf16 weights, f32 biases. Pad last layer to PAD_OUT columns.
    w1b = w1.astype(jnp.bfloat16)
    w2b = w2.astype(jnp.bfloat16)
    w3p = jnp.zeros((H2, PAD_OUT), jnp.bfloat16).at[:, :NOUT].set(w3.astype(jnp.bfloat16))
    b3p = jnp.zeros((1, PAD_OUT), jnp.float32).at[:, :NOUT].set(b3)

    grid = (B_pad // tb,)

    flops = 2 * B_pad * (F * H1 + H1 * H2 + H2 * PAD_OUT)
    bytes_accessed = (x_p.size * 4
                      + w1b.size * 2 + w2b.size * 2 + w3p.size * 2
                      + b1.size * 4 + b2.size * 4 + b3p.size * 4
                      + B_pad * PAD_OUT * 4)

    # VMEM footprint: resident weights + double-buffered x/out tiles + activations.
    weights_bytes = (w1b.size + w2b.size + w3p.size) * 2 + (b1.size + b2.size + b3p.size) * 4
    stream_bytes = 2 * (tb * F * 4 + tb * PAD_OUT * 4)
    act_bytes = 3 * tb * max(H1, H2) * 4
    vmem_limit = min(max(weights_bytes + stream_bytes + act_bytes + (4 << 20), 16 << 20),
                     64 << 20)

    resident = lambda shape: pl.BlockSpec(shape, lambda i: (0, 0))  # stays in VMEM

    out = pl.pallas_call(
        dqn_kernel,
        out_shape=jax.ShapeDtypeStruct((B_pad, PAD_OUT), jnp.float32),
        grid=grid,
        in_specs=[
            pl.BlockSpec((tb, F), lambda i: (i, 0)),   # streamed f32 x tile
            resident(w1b.shape), resident(b1.shape),
            resident(w2b.shape), resident(b2.shape),
            resident(w3p.shape), resident(b3p.shape),
        ],
        out_specs=pl.BlockSpec((tb, PAD_OUT), lambda i: (i, 0)),
        compiler_params=pltpu.CompilerParams(
            dimension_semantics=("parallel",),          # shard batch across TCs (v7x)
            vmem_limit_bytes=vmem_limit,
        ),
        cost_estimate=pl.CostEstimate(
            flops=flops, transcendentals=0, bytes_accessed=bytes_accessed),
    )(x_p, w1b, b1, w2b, b2, w3p, b3p)

    return out[:B, :NOUT]


def init_params(key):
    """Deterministic init matching nn.Linear default: U(-1/sqrt(fan_in), 1/sqrt(fan_in)).
    Weights stored [in, out] (transposed relative to PyTorch's [out, in])."""
    dims = [(5, 256), (256, 256), (256, 2)]
    params = []
    keys = jax.random.split(key, 2 * len(dims))
    for i, (fan_in, fan_out) in enumerate(dims):
        bound = 1.0 / jnp.sqrt(jnp.float32(fan_in))
        w = jax.random.uniform(keys[2 * i], (fan_in, fan_out), jnp.float32, -bound, bound)
        b = jax.random.uniform(keys[2 * i + 1], (1, fan_out), jnp.float32, -bound, bound)
        params += [w, b]
    return tuple(params)


def reference_forward(x, params):
    w1, b1, w2, b2, w3, b3 = params
    h1 = jnp.maximum(x @ w1 + b1, 0.0)
    h2 = jnp.maximum(h1 @ w2 + b2, 0.0)
    return h2 @ w3 + b3


if __name__ == "__main__":
    key = jax.random.PRNGKey(0)
    pkey, xkey, xkey2 = jax.random.split(key, 3)
    params = init_params(pkey)

    # Small batch (single grid step, typical DQN acting path).
    B = 8
    x = jax.random.normal(xkey, (B, 5), dtype=jnp.float32)
    out = jax.block_until_ready(dqn_forward(x, params))
    ref = reference_forward(x, params)
    assert out.shape == (B, 2), out.shape
    # bf16 weights/activations with f32 accumulation -> loosened tolerance vs f32 ref.
    # NOTE: deliberate precision choice; ~1e-2 relative error can flip argmax on
    # near-tied Q-values.
    assert jnp.allclose(out, ref, atol=5e-2, rtol=5e-2), "mismatch vs reference (B=8)"

    # Larger, non-tile-aligned batch (exercises balanced tiling + padding + slicing,
    # even grid step count).
    B2 = 1000
    x2 = jax.random.normal(xkey2, (B2, 5), dtype=jnp.float32)
    out2 = jax.block_until_ready(dqn_forward(x2, params, tb_max=256))
    ref2 = reference_forward(x2, params)
    assert out2.shape == (B2, 2), out2.shape
    assert jnp.allclose(out2, ref2, atol=5e-2, rtol=5e-2), "mismatch vs reference (B=1000)"

    # Default (large-tile) path as well.
    out3 = jax.block_until_ready(dqn_forward(x2, params))
    assert jnp.allclose(out3, ref2, atol=5e-2, rtol=5e-2), "mismatch vs reference (default tb)"

    print("KERNEL_OK")
</pallas_src>

<mosaic_0001>
module attributes {stable_mosaic.version = 11 : i64} {
  func.func @dqn_kernel(%arg0: i32, %arg1: memref<16x5xf32, #tpu.memory_space<vmem>>, %arg2: memref<5x256xbf16, #tpu.memory_space<vmem>>, %arg3: memref<1x256xf32, #tpu.memory_space<vmem>>, %arg4: memref<256x256xbf16, #tpu.memory_space<vmem>>, %arg5: memref<1x256xf32, #tpu.memory_space<vmem>>, %arg6: memref<256x8xbf16, #tpu.memory_space<vmem>>, %arg7: memref<1x8xf32, #tpu.memory_space<vmem>>, %arg8: memref<16x8xf32, #tpu.memory_space<vmem>>) attributes {dimension_semantics = [#tpu.dimension_semantics<parallel>], iteration_bounds = array<i64: 1>, scalar_prefetch = 0 : i64, scratch_operands = 0 : i64, tpu.core_type = #tpu.core_type<tc>, window_params = [{transform_indices = @transform_0, window_bounds = array<i64: 16, 5>}, {pipeline_mode = #tpu.pipeline_mode<synchronous>, transform_indices = @transform_1, window_bounds = array<i64: 5, 256>}, {pipeline_mode = #tpu.pipeline_mode<synchronous>, transform_indices = @transform_2, window_bounds = array<i64: 1, 256>}, {pipeline_mode = #tpu.pipeline_mode<synchronous>, transform_indices = @transform_3, window_bounds = array<i64: 256, 256>}, {pipeline_mode = #tpu.pipeline_mode<synchronous>, transform_indices = @transform_4, window_bounds = array<i64: 1, 256>}, {pipeline_mode = #tpu.pipeline_mode<synchronous>, transform_indices = @transform_5, window_bounds = array<i64: 256, 8>}, {pipeline_mode = #tpu.pipeline_mode<synchronous>, transform_indices = @transform_6, window_bounds = array<i64: 1, 8>}, {transform_indices = @transform_7, window_bounds = array<i64: 16, 8>}]} {
    %c0 = arith.constant 0 : index
    %c0_0 = arith.constant 0 : index
    %0 = vector.load %arg1[%c0, %c0_0] : memref<16x5xf32, #tpu.memory_space<vmem>>, vector<16x5xf32>
    %1 = arith.truncf %0 : vector<16x5xf32> to vector<16x5xbf16>
    %c0_1 = arith.constant 0 : index
    %c0_2 = arith.constant 0 : index
    %2 = vector.load %arg2[%c0_1, %c0_2] : memref<5x256xbf16, #tpu.memory_space<vmem>>, vector<5x256xbf16>
    %cst = arith.constant dense<0.000000e+00> : vector<16x256xf32>
    %3 = tpu.matmul %1, %2, %cst {dimension_numbers = #tpu.dot_dimension_numbers<[1], [0], [0], [1], [0, 0, 1, 1], [], []>} : vector<16x5xbf16>, vector<5x256xbf16>, vector<16x256xf32> -> vector<16x256xf32>
    %c0_3 = arith.constant 0 : index
    %c0_4 = arith.constant 0 : index
    %4 = vector.load %arg3[%c0_3, %c0_4] : memref<1x256xf32, #tpu.memory_space<vmem>>, vector<1x256xf32>
    %5 = vector.broadcast %4 : vector<1x256xf32> to vector<16x256xf32>
    %6 = arith.addf %3, %5 : vector<16x256xf32>
    %7 = arith.truncf %6 : vector<16x256xf32> to vector<16x256xbf16>
    %cst_5 = arith.constant 0.000000e+00 : bf16
    %8 = vector.broadcast %cst_5 : bf16 to vector<16x256xbf16>
    %9 = arith.maximumf %7, %8 : vector<16x256xbf16>
    %c0_6 = arith.constant 0 : index
    %c0_7 = arith.constant 0 : index
    %10 = vector.load %arg4[%c0_6, %c0_7] : memref<256x256xbf16, #tpu.memory_space<vmem>>, vector<256x256xbf16>
    %cst_8 = arith.constant dense<0.000000e+00> : vector<16x256xf32>
    %11 = tpu.matmul %9, %10, %cst_8 {dimension_numbers = #tpu.dot_dimension_numbers<[1], [0], [0], [1], [0, 0, 1, 1], [], []>} : vector<16x256xbf16>, vector<256x256xbf16>, vector<16x256xf32> -> vector<16x256xf32>
    %c0_9 = arith.constant 0 : index
    %c0_10 = arith.constant 0 : index
    %12 = vector.load %arg5[%c0_9, %c0_10] : memref<1x256xf32, #tpu.memory_space<vmem>>, vector<1x256xf32>
    %13 = vector.broadcast %12 : vector<1x256xf32> to vector<16x256xf32>
    %14 = arith.addf %11, %13 : vector<16x256xf32>
    %15 = arith.truncf %14 : vector<16x256xf32> to vector<16x256xbf16>
    %cst_11 = arith.constant 0.000000e+00 : bf16
    %16 = vector.broadcast %cst_11 : bf16 to vector<16x256xbf16>
    %17 = arith.maximumf %15, %16 : vector<16x256xbf16>
    %c0_12 = arith.constant 0 : index
    %c0_13 = arith.constant 0 : index
    %18 = vector.load %arg6[%c0_12, %c0_13] : memref<256x8xbf16, #tpu.memory_space<vmem>>, vector<256x8xbf16>
    %cst_14 = arith.constant dense<0.000000e+00> : vector<16x8xf32>
    %19 = tpu.matmul %17, %18, %cst_14 {dimension_numbers = #tpu.dot_dimension_numbers<[1], [0], [0], [1], [0, 0, 1, 1], [], []>} : vector<16x256xbf16>, vector<256x8xbf16>, vector<16x8xf32> -> vector<16x8xf32>
    %c0_15 = arith.constant 0 : index
    %c0_16 = arith.constant 0 : index
    %20 = vector.load %arg7[%c0_15, %c0_16] : memref<1x8xf32, #tpu.memory_space<vmem>>, vector<1x8xf32>
    %21 = vector.broadcast %20 : vector<1x8xf32> to vector<16x8xf32>
    %22 = arith.addf %19, %21 : vector<16x8xf32>
    %c0_17 = arith.constant 0 : index
    %c0_18 = arith.constant 0 : index
    %23 = vector.load %arg8[%c0_17, %c0_18] : memref<16x8xf32, #tpu.memory_space<vmem>>, vector<16x8xf32>
    tpu.vector_store %arg8[%c0_17, %c0_18], %22 {strides = array<i32>} : memref<16x8xf32, #tpu.memory_space<vmem>>, vector<16x8xf32>,
    return
  }
  func.func @transform_0(%arg0: i32) -> (i32, i32) {
    %c0_i32 = arith.constant 0 : i32
    %c0_i32_0 = arith.constant 0 : i32
    return %arg0, %c0_i32 : i32, i32
  }
  func.func @transform_1(%arg0: i32) -> (i32, i32) {
    %c0_i32 = arith.constant 0 : i32
    %c0_i32_0 = arith.constant 0 : i32
    %c0_i32_1 = arith.constant 0 : i32
    return %c0_i32, %c0_i32_0 : i32, i32
  }
  func.func @transform_2(%arg0: i32) -> (i32, i32) {
    %c0_i32 = arith.constant 0 : i32
    %c0_i32_0 = arith.constant 0 : i32
    %c0_i32_1 = arith.constant 0 : i32
    return %c0_i32, %c0_i32_0 : i32, i32
  }
  func.func @transform_3(%arg0: i32) -> (i32, i32) {
    %c0_i32 = arith.constant 0 : i32
    %c0_i32_0 = arith.constant 0 : i32
    %c0_i32_1 = arith.constant 0 : i32
    return %c0_i32, %c0_i32_0 : i32, i32
  }
  func.func @transform_4(%arg0: i32) -> (i32, i32) {
    %c0_i32 = arith.constant 0 : i32
    %c0_i32_0 = arith.constant 0 : i32
    %c0_i32_1 = arith.constant 0 : i32
    return %c0_i32, %c0_i32_0 : i32, i32
  }
  func.func @transform_5(%arg0: i32) -> (i32, i32) {
    %c0_i32 = arith.constant 0 : i32
    %c0_i32_0 = arith.constant 0 : i32
    %c0_i32_1 = arith.constant 0 : i32
    return %c0_i32, %c0_i32_0 : i32, i32
  }
  func.func @transform_6(%arg0: i32) -> (i32, i32) {
    %c0_i32 = arith.constant 0 : i32
    %c0_i32_0 = arith.constant 0 : i32
    %c0_i32_1 = arith.constant 0 : i32
    return %c0_i32, %c0_i32_0 : i32, i32
  }
  func.func @transform_7(%arg0: i32) -> (i32, i32) {
    %c0_i32 = arith.constant 0 : i32
    %c0_i32_0 = arith.constant 0 : i32
    return %arg0, %c0_i32 : i32, i32
  }
}

</mosaic_0001>

<bundles_post_ra>
// kernel: tpu_custom_call.1
= control target key start
LH: loop header
LB: loop body
LE: loop exit
PB: predicated region body
PF: predicated region fallthrough
CT: control target
= control target key end

     0   :  { %12 = vsyncpa [#allocation3], 0  ;;  %s727_s24 = smov [#allocation2]   ;;  %s861_s0 = inlined_call_operand.vmem [shape: f32[16,5], index: 0, kind: input, shape index: {}]   ;;  %s862_s1 = inlined_call_operand.vmem [shape: bf16[5,256], index: 1, kind: input, shape index: {}]   ;;  %s863_s2 = inlined_call_operand.vmem [shape: f32[1,256], index: 2, kind: input, shape index: {}]   ;;  %s864_s3 = inlined_call_operand.hbm [shape: bf16[256,256], index: 3, kind: input, shape index: {}]   ;;  %s865_s4 = inlined_call_operand.vmem [shape: f32[1,256], index: 4, kind: input, shape index: {}]   ;;  %s866_s5 = inlined_call_operand.vmem [shape: bf16[256,8], index: 5, kind: input, shape index: {}]   ;;  %s867_s6 = inlined_call_operand.vmem [shape: f32[1,8], index: 6, kind: input, shape index: {}]   ;;  %s868_s7 = inlined_call_operand.vmem [shape: f32[16,8], index: 7, kind: output, shape index: {}]  }
   0x1   :  { %s24_s25 = sshll.u32 %s727_s24, 4  ;;  %s703_s28 = scalar_lea.hbm %s864_s3, 4096  ;;  %s25_s25 = int_to_ptr.vmem [resolvable:$true] %s24_s25 }
   0x2   :  { %p704_p0 = scmp.ne.s32.totalorder %s864_s3, %s703_s28  ;;  %p707_p1 = scmp.lt.u32.totalorder %s703_s28, %s864_s3 }
   0x4   :  { %p709_p2 = pnand %p707_p1, %p704_p0 }
   0x6   :  { %712 = shalt.err (!%p709_p2)
}
   0x7   :  { %s713_s10 = scalar_lea.vmem %s25_s25, 4096  ;;  %p718_p4 = scmp.lt.s32.totalorder %s25_s25, %s25_s25 }
   0x8   :  { %p714_p3 = scmp.ne.s32.totalorder %s25_s25, %s713_s10  ;;  %p719_p5 = scmp.lt.s32.totalorder %s713_s10, %s713_s10 }
   0xa   :  { %p720_p6 = por %p719_p5, %p718_p4 }
   0xc   :  { %p721_p7 = pnand %p720_p6, %p714_p3 }
   0xe   :  { %724 = shalt.err (!%p721_p7)
}
   0xf   :  { %s728_s11 = smov 128   ;;  %s729_s12 = smov 8  }
  0x10   :  { %30 = dma.hbm_to_vmem [thread:$0]  %s864_s3, 4096, %s25_s25, [#allocation3], %s728_s11, %s728_s11, %s729_s12  }
  0x11   :  { %725 = dma.done.wait [#allocation3], 4096  }
  0x12   :  { %726 = vsyncadd [#allocation3], 4294963200  ;;  %vm66_vm0 = vcmask 1041408   ;;  %v730_v0 = vmov 0   ;;  %vm67_vm1 = vcmask 1042432   ;;  %v731_v1 = vmov 65535  }
  0x13   :  { %108 = vmatprep.mubr.bf16.mxu0 %v730_v0  ;;  %v68_v2 = vsel %vm66_vm0, 4294967295, %v731_v1  ;;  %v44_v3 = vld [vmem:[%s862_s1] sm:$0x77]  ;;  %v42_v6 = vld [vmem:[%s861_s0 + $0x8] sm:$0xff]  ;;  %v642_v13 = vld [vmem:[#allocation2 + $0x14] ss:$8 sps:$4 sm:$0xff]   ;;  %v47_v55 = vlaneseq }
  0x14   :  { %v69_v4 = vsel %vm67_vm1, %v68_v2, 0  ;;  %v41_v5 = vld [vmem:[%s861_s0] sm:$0xff]  ;;  %v559_v7 = vcombine.high %v44_v3, %v44_v3  ;;  %v558_v8 = vcombine.low %v44_v3, %v44_v3  ;;  %v644_v14 = vld [vmem:[#allocation2 + $0x10] ss:$8 sps:$4 sm:$0xff]   ;;  %vm62_vm2 = vcmask 39936   ;;  %v689_v46 = vld [vmem:[%s866_s5 + $0x48] sm:$0xff]  }
  0x15   :  { %v639_v9 = vld [vmem:[#allocation2 + $0x4] ss:$8 sps:$4 sm:$0xff]   ;;  %v641_v10 = vld [vmem:[#allocation2] ss:$8 sps:$4 sm:$0xff]   ;;  %v43_v15 = vpack.c.bf16 %v42_v6, %v41_v5  ;;  %v648_v18 = vld [vmem:[#allocation2 + $0x34] ss:$8 sps:$4 sm:$0xff]  }
  0x16   :  { %v74_v11 = vand.u32 %v559_v7, %v69_v4  ;;  %v71_v12 = vand.u32 %v558_v8, %v69_v4  ;;  %327 = vmatprep.subr.bf16.mxu1 %v639_v9  ;;  %v645_v16 = vld [vmem:[#allocation2 + $0x24] ss:$8 sps:$4 sm:$0xff]   ;;  %v647_v17 = vld [vmem:[#allocation2 + $0x20] ss:$8 sps:$4 sm:$0xff]   ;;  %v650_v19 = vld [vmem:[#allocation2 + $0x30] ss:$8 sps:$4 sm:$0xff]  }
  0x17   :  { %328 = vmatpush1.bf16.msra.mxu1 %v641_v10  ;;  %v651_v20 = vld [vmem:[#allocation2 + $0x44] ss:$8 sps:$4 sm:$0xff]   ;;  %v653_v21 = vld [vmem:[#allocation2 + $0x40] ss:$8 sps:$4 sm:$0xff]   ;;  %v654_v22 = vld [vmem:[#allocation2 + $0x54] ss:$8 sps:$4 sm:$0xff]  }
  0x18   :  { %76 = vmatprep.subr.bf16.mxu0 %v74_v11  ;;  %329 = vmatprep.subr.bf16.mxu1 %v642_v13  ;;  %v656_v23 = vld [vmem:[#allocation2 + $0x50] ss:$8 sps:$4 sm:$0xff]   ;;  %v657_v24 = vld [vmem:[#allocation2 + $0x64] ss:$8 sps:$4 sm:$0xff]   ;;  %v659_v25 = vld [vmem:[#allocation2 + $0x60] ss:$8 sps:$4 sm:$0xff]  }
  0x19   :  { %77 = vmatpush1.bf16.msra.mxu0 %v71_v12  ;;  %v660_v26 = vld [vmem:[#allocation2 + $0x74] ss:$8 sps:$4 sm:$0xff]   ;;  %v662_v27 = vld [vmem:[#allocation2 + $0x70] ss:$8 sps:$4 sm:$0xff]   ;;  %v663_v28 = vld [vmem:[#allocation2 + $0x84] ss:$8 sps:$4 sm:$0xff]  }
  0x1a   :  { %v665_v29 = vld [vmem:[#allocation2 + $0x80] ss:$8 sps:$4 sm:$0xff]   ;;  %v666_v30 = vld [vmem:[#allocation2 + $0x94] ss:$8 sps:$4 sm:$0xff]   ;;  %v668_v31 = vld [vmem:[#allocation2 + $0x90] ss:$8 sps:$4 sm:$0xff]  }
  0x1b   :  { %330 = vmatpush1.bf16.msra.mxu1 %v644_v14  ;;  %v669_v32 = vld [vmem:[#allocation2 + $0xa4] ss:$8 sps:$4 sm:$0xff]   ;;  %v671_v33 = vld [vmem:[#allocation2 + $0xa0] ss:$8 sps:$4 sm:$0xff]   ;;  %v672_v34 = vld [vmem:[#allocation2 + $0xb4] ss:$8 sps:$4 sm:$0xff]  }
  0x1c   :  { %560 = vmatmul.mubr.msk.bf16.vlgmr.msra.gmra.mrb[0].mxu0 %vm62_vm2, %v43_v15  ;;  %331 = vmatprep.subr.bf16.mxu1 %v645_v16  ;;  %v674_v35 = vld [vmem:[#allocation2 + $0xb0] ss:$8 sps:$4 sm:$0xff]   ;;  %v675_v36 = vld [vmem:[#allocation2 + $0xc4] ss:$8 sps:$4 sm:$0xff]   ;;  %v677_v37 = vld [vmem:[#allocation2 + $0xc0] ss:$8 sps:$4 sm:$0xff]  }
  0x1d   :  { %v678_v38 = vld [vmem:[#allocation2 + $0xd4] ss:$8 sps:$4 sm:$0xff]   ;;  %v680_v39 = vld [vmem:[#allocation2 + $0xd0] ss:$8 sps:$4 sm:$0xff]   ;;  %v681_v40 = vld [vmem:[#allocation2 + $0xe4] ss:$8 sps:$4 sm:$0xff]  }
  0x1e   :  { %v683_v41 = vld [vmem:[#allocation2 + $0xe0] ss:$8 sps:$4 sm:$0xff]   ;;  %v684_v42 = vld [vmem:[#allocation2 + $0xf4] ss:$8 sps:$4 sm:$0xff]   ;;  %v686_v43 = vld [vmem:[#allocation2 + $0xf0] ss:$8 sps:$4 sm:$0xff]  }
  0x1f   :  { %332 = vmatpush1.bf16.msra.mxu1 %v647_v17  ;;  %v687_v44 = vld [vmem:[%s866_s5 + $0x40] sm:$0xff]   ;;  %v690_v47 = vld [vmem:[%s866_s5 + $0x8] sm:$0xff]   ;;  %v691_v48 = vld [vmem:[%s866_s5 + $0x50] sm:$0xff]   ;;  %v48_v56 = vshrl.u32 %v47_v55, 7  ;;  %vm550_vm3 = vcmask 64512  }
  0x20   :  { %333 = vmatprep.subr.bf16.mxu1 %v648_v18  ;;  %v688_v45 = vld [vmem:[%s866_s5] sm:$0xff]   ;;  %610 = vmatprep.subr.bf16.mxu0 %v687_v44  ;;  %v692_v49 = vld [vmem:[%s866_s5 + $0x10] sm:$0xff]   ;;  %v693_v50 = vld [vmem:[%s866_s5 + $0x58] sm:$0xff]  }
  0x21   :  { %611 = vmatpush3.bf16.msra.mxu0 %v688_v45  ;;  %v694_v51 = vld [vmem:[%s866_s5 + $0x18] sm:$0xff]   ;;  %v695_v52 = vld [vmem:[%s866_s5 + $0x60] sm:$0xff]   ;;  %v697_v54 = vld [vmem:[%s866_s5 + $0x68] sm:$0xff]   ;;  %v49_v57 = vsub.s32 0, %v48_v56  ;;  %v53_v59 = vsub.s32 1, %v48_v56 }
  0x22   :  { %612 = vmatprep.subr.bf16.mxu0 %v689_v46  ;;  %v696_v53 = vld [vmem:[%s866_s5 + $0x20] sm:$0xff]   ;;  %v698_v11 = vld [vmem:[%s866_s5 + $0x28] sm:$0xff]   ;;  %v699_v12 = vld [vmem:[%s866_s5 + $0x70] sm:$0xff]  }
  0x23   :  { %334 = vmatpush1.bf16.msra.mxu1 %v650_v19  ;;  %v45_v58 = vld [vmem:[%s863_s2] sm:$0x3]  ;;  %v700_v13 = vld [vmem:[%s866_s5 + $0x30] sm:$0xff]   ;;  %v701_v14 = vld [vmem:[%s866_s5 + $0x78] sm:$0xff]  }
  0x24   :  { %335 = vmatprep.subr.bf16.mxu1 %v651_v20  ;;  %v50_v60 = vrot.slane %v45_v58, %v49_v57  ;;  %v54_v62 = vrot.slane %v45_v58, %v53_v59  ;;  %v702_v15 = vld [vmem:[%s866_s5 + $0x38] sm:$0xff]   ;;  %v155_v16 = vld [vmem:[%s865_s4] sm:$0x3] }
  0x25   :  { %613 = vmatpush3.bf16.msra.mxu0 %v690_v47  ;;  %v160_v17 = vrot.slane %v155_v16, %v49_v57  ;;  %v164_v19 = vrot.slane %v155_v16, %v53_v59 }
  0x26   :  { %614 = vmatprep.subr.bf16.mxu0 %v691_v48 }
  0x27   :  { %336 = vmatpush1.bf16.msra.mxu1 %v653_v21 }
  0x28   :  { %337 = vmatprep.subr.bf16.mxu1 %v654_v22 }
  0x29   :  { %615 = vmatpush3.bf16.msra.mxu0 %v692_v49 }
  0x2a   :  { %616 = vmatprep.subr.bf16.mxu0 %v693_v50 }
  0x2b   :  { %338 = vmatpush1.bf16.msra.mxu1 %v656_v23 }
  0x2c   :  { %339 = vmatprep.subr.bf16.mxu1 %v657_v24 }
  0x2d   :  { %617 = vmatpush3.bf16.msra.mxu0 %v694_v51 }
  0x2e   :  { %618 = vmatprep.subr.bf16.mxu0 %v695_v52 }
  0x2f   :  { %340 = vmatpush1.bf16.msra.mxu1 %v659_v25 }
  0x30   :  { %341 = vmatprep.subr.bf16.mxu1 %v660_v26 }
  0x31   :  { %619 = vmatpush3.bf16.msra.mxu0 %v696_v53 }
  0x32   :  { %620 = vmatprep.subr.bf16.mxu0 %v697_v54 }
  0x33   :  { %342 = vmatpush1.bf16.msra.mxu1 %v662_v27 }
  0x34   :  { %343 = vmatprep.subr.bf16.mxu1 %v663_v28 }
  0x35   :  { %621 = vmatpush3.bf16.msra.mxu0 %v698_v11 }
  0x36   :  { %622 = vmatprep.subr.bf16.mxu0 %v699_v12 }
  0x37   :  { %344 = vmatpush1.bf16.msra.mxu1 %v665_v29 }
  0x38   :  { %345 = vmatprep.subr.bf16.mxu1 %v666_v30 }
  0x39   :  { %623 = vmatpush3.bf16.msra.mxu0 %v700_v13 }
  0x3a   :  { %624 = vmatprep.subr.bf16.mxu0 %v701_v14 }
  0x3b   :  { %346 = vmatpush1.bf16.msra.mxu1 %v668_v31 }
  0x3c   :  { %347 = vmatprep.subr.bf16.mxu1 %v669_v32  ;;  %v593_v32 = vld [vmem:[%s867_s6] ss:$0 sm:$0xff] }
  0x3d   :  { %625 = vmatpush3.bf16.msra.mxu0 %v702_v15 }
  0x3f   :  { %348 = vmatpush1.bf16.msra.mxu1 %v671_v33 }
  0x40   :  { %349 = vmatprep.subr.bf16.mxu1 %v672_v34 }
  0x43   :  { %350 = vmatpush1.bf16.msra.mxu1 %v674_v35 }
  0x44   :  { %351 = vmatprep.subr.bf16.mxu1 %v675_v36 }
  0x47   :  { %352 = vmatpush1.bf16.msra.mxu1 %v677_v37 }
  0x48   :  { %353 = vmatprep.subr.bf16.mxu1 %v678_v38 }
  0x4b   :  { %354 = vmatpush1.bf16.msra.mxu1 %v680_v39 }
  0x4c   :  { %355 = vmatprep.subr.bf16.mxu1 %v681_v40 }
  0x4f   :  { %356 = vmatpush1.bf16.msra.mxu1 %v683_v41 }
  0x50   :  { %357 = vmatprep.subr.bf16.mxu1 %v684_v42 }
  0x53   :  { %358 = vmatpush1.bf16.msra.mxu1 %v686_v43 }
  0xef   :  { %v110_v61 = vpop.f32.mrb[0].mxu0 }
  0xf0   :  { %v112_v63 = vpop.f32.mrb[1].mxu0  ;;  %v111_v2 = vadd.f32 %v110_v61, %v50_v60 }
  0xf1   :  { %v114_v1 = vpop.f32.mrb[2].mxu0  ;;  %v113_v5 = vadd.f32 %v112_v63, %v54_v62 }
  0xf2   :  { %v115_v3 = vadd.f32 %v114_v1, %v50_v60  ;;  %v116_v4 = vpop.f32.mrb[3].mxu0 }
  0xf3   :  { %v117_v6 = vadd.f32 %v116_v4, %v54_v62 }
  0xf4   :  { %v119_v7 = vpack.c.bf16 %v115_v3, %v111_v2 }
  0xf5   :  { %v120_v8 = vpack.c.bf16 %v117_v6, %v113_v5 }
  0xf6   :  { %v121_v10 = vmax.bf16 %v730_v0, %v119_v7 }
  0xf7   :  { %v122_v9 = vmax.bf16 %v730_v0, %v120_v8 }
  0xf9   :  { %359 = vmatprep.mubr.bf16.mxu1 %v122_v9 }
  0xfa   :  { %360 = vmatmul.mubr.bf16.vlgmr.msra.gmra.mrb[0].mxu1 %v121_v10 }
 0x1cd   :  { %v361_v18 = vpop.f32.mrb[0].mxu1 }
 0x1ce   :  { %v363_v20 = vpop.f32.mrb[1].mxu1  ;;  %v362_v22 = vadd.f32 %v361_v18, %v160_v17 }
 0x1cf   :  { %v365_v21 = vpop.f32.mrb[2].mxu1  ;;  %v364_v25 = vadd.f32 %v363_v20, %v164_v19 }
 0x1d0   :  { %v366_v23 = vadd.f32 %v365_v21, %v160_v17  ;;  %v367_v24 = vpop.f32.mrb[3].mxu1 }
 0x1d1   :  { %v368_v26 = vadd.f32 %v367_v24, %v164_v19 }
 0x1d2   :  { %v370_v27 = vpack.c.bf16 %v366_v23, %v362_v22 }
 0x1d3   :  { %v371_v28 = vpack.c.bf16 %v368_v26, %v364_v25 }
 0x1d4   :  { %v372_v30 = vmax.bf16 %v730_v0, %v370_v27 }
 0x1d5   :  { %v373_v29 = vmax.bf16 %v730_v0, %v371_v28 }
 0x1d7   :  { %541 = vmatprep.mubr.bf16.mxu0 %v373_v29 }
 0x1d8   :  { %542 = vmatmul.mubr.bf16.vlgmr.msra.gmra.mrb[4].mxu0 %v372_v30 }
 0x2ab   :  { %v626_v31 = vpop.f32.mrb[4].mxu0 }
 0x2ac   :  { %v627_v33 = vpop.f32.mrb[5].mxu0 }
 0x2ad   :  { %v628_v34 = vadd.f32 %v627_v33, %v626_v31  ;;  %v629_v35 = vpop.f32.mrb[6].mxu0 }
 0x2ae   :  { %v630_v36 = vpop.f32.mrb[7].mxu0 }
 0x2af   :  { %v544_v37 = vadd.f32 %v628_v34, %v593_v32  ;;  %v631_v38 = vadd.f32 %v630_v36, %v629_v35 }
 0x2b1   :  { %551 = vst.msk [vmem:[%s868_s7] sm:$0xff] %vm550_vm3, %v544_v37  ;;  %v547_v39 = vadd.f32 %v631_v38, %v593_v32 }
 0x2b3   :  { %552 = vst.msk [vmem:[%s868_s7 + $0x8] sm:$0xff] %vm550_vm3, %v547_v39 }
 0x2b4   :  { %557 = vsyncpa [#allocation3], 1 }

</bundles_post_ra>
